<compile_context>
chip_gen: v5e
topology: v5e:2x2
jax: 0.10.0
libtpu: 0.0.40
codegen_flags: <defaults>
</compile_context>

<pallas_src>
import functools
import numpy as np
import jax
import jax.numpy as jnp
from jax.experimental import pallas as pl
from jax.experimental.pallas import tpu as pltpu


# ----------------------------- shared cell math -----------------------------

def _cell_math(x, hn, ht, c, wx, whn, wht, b, peep, hidden):
    """One LSTM cell step on VMEM-resident values.

    Matmul operands are cast to the weight dtype (f32 or bf16); accumulation
    and all gate / peephole / activation math is f32.  Gate order along the
    4H axis: [input, forget, gate(g), output].
    """
    mdt = wx.dtype
    gates = jnp.dot(x.astype(mdt), wx, preferred_element_type=jnp.float32)
    gates = gates + jnp.dot(hn.astype(mdt), whn, preferred_element_type=jnp.float32)
    gates = gates + jnp.dot(ht.astype(mdt), wht, preferred_element_type=jnp.float32)
    gates = gates + b                                 # [bm, 4H] f32

    gi = gates[:, 0 * hidden:1 * hidden]              # 128-lane aligned slices
    gf = gates[:, 1 * hidden:2 * hidden]
    gg = gates[:, 2 * hidden:3 * hidden]
    go = gates[:, 3 * hidden:4 * hidden]

    ci = peep[0:1, :]                                 # [1, H] peephole weights
    cf = peep[1:2, :]
    co = peep[2:3, :]

    i_t = jax.nn.sigmoid(gi + ci * c)
    f_t = jax.nn.sigmoid(gf + cf * c)
    c_t = i_t * jnp.tanh(gg) + f_t * c
    o_t = jax.nn.sigmoid(go + co * c)                 # uses OLD c (matches PyTorch)
    h_t = o_t * jnp.tanh(c_t)
    return h_t, c_t


def _default_block_b(B):
    """Batch tile: for B >= 16 make sure the 'parallel' grid has >= 2 steps so
    both v7x TensorCores get work; keep multiples of 8 sublanes; cap at 256
    (VMEM stays far below even the v5e 16 MiB scoped default)."""
    if B < 16:
        return B
    half = -(-B // 2)               # cdiv(B, 2)
    half = -(-half // 8) * 8        # round up to multiple of 8
    return int(min(256, max(8, half)))


# ----------------------------- single-step kernel -----------------------------

def _lstm_cell_kernel(x_ref, hn_ref, ht_ref, c_ref,
                      wx_ref, whn_ref, wht_ref, b_ref, peep_ref,
                      hc_out_ref, *, hidden):
    h_t, c_t = _cell_math(x_ref[...], hn_ref[...], ht_ref[...], c_ref[...],
                          wx_ref[...], whn_ref[...], wht_ref[...],
                          b_ref[...], peep_ref[...], hidden)
    # Fused lane-dense [bm, 2H] output slab: one write-back DMA per block.
    hc_out_ref[:, :hidden] = h_t
    hc_out_ref[:, hidden:] = c_t


def lstm_cell(x, h_ln, h_lt, c, params, *, block_b=None):
    """Single LSTM cell step (matches the PyTorch forward).

    x: [B, input_sz], h_ln/h_lt/c: [B, H] -> (h_t, c_t) each [B, H] f32.
    """
    B, input_sz = x.shape
    hidden = c.shape[1]
    four_h = 4 * hidden
    if block_b is None:
        block_b = _default_block_b(B)
    grid = (pl.cdiv(B, block_b),)

    kernel = functools.partial(_lstm_cell_kernel, hidden=hidden)
    hc = pl.pallas_call(
        kernel,
        out_shape=jax.ShapeDtypeStruct((B, 2 * hidden), jnp.float32),
        grid=grid,
        in_specs=[
            pl.BlockSpec((block_b, input_sz), lambda i: (i, 0)),   # x
            pl.BlockSpec((block_b, hidden),   lambda i: (i, 0)),   # h_ln
            pl.BlockSpec((block_b, hidden),   lambda i: (i, 0)),   # h_lt
            pl.BlockSpec((block_b, hidden),   lambda i: (i, 0)),   # c
            pl.BlockSpec((input_sz, four_h),  lambda i: (0, 0)),   # Wx   [in, 4H]
            pl.BlockSpec((hidden, four_h),    lambda i: (0, 0)),   # Whn  [H, 4H]
            pl.BlockSpec((hidden, four_h),    lambda i: (0, 0)),   # Wht  [H, 4H]
            pl.BlockSpec((1, four_h),         lambda i: (0, 0)),   # bias [1, 4H]
            pl.BlockSpec((3, hidden),         lambda i: (0, 0)),   # peephole [3, H]
        ],
        out_specs=pl.BlockSpec((block_b, 2 * hidden), lambda i: (i, 0)),
        compiler_params=pltpu.CompilerParams(
            dimension_semantics=("parallel",)),
    )(x, h_ln, h_lt, c,
      params["wx"], params["whn"], params["wht"], params["b"], params["peep"])
    return hc[:, :hidden], hc[:, hidden:]


# ----------------------------- sequence-resident kernel -----------------------------

def _lstm_seq_kernel(x_ref, hn_ref, h0_ref, c0_ref,
                     wx_ref, whn_ref, wht_ref, b_ref, peep_ref,
                     hc_out_ref, h_prev, c_prev, *, hidden):
    # Recurrent carry lives in VMEM scratch; (re)initialize at t == 0 for each
    # batch block.  Padded tail rows (B % block_b) carry garbage but never mix
    # into valid rows (matmuls mix K, not M) and their stores are masked.
    @pl.when(pl.program_id(1) == 0)
    def _():
        h_prev[...] = h0_ref[...]
        c_prev[...] = c0_ref[...]

    h_t, c_t = _cell_math(x_ref[...], hn_ref[...], h_prev[...], c_prev[...],
                          wx_ref[...], whn_ref[...], wht_ref[...],
                          b_ref[...], peep_ref[...], hidden)

    hc_out_ref[:, :hidden] = h_t
    hc_out_ref[:, hidden:] = c_t
    h_prev[...] = h_t
    c_prev[...] = c_t


def lstm_sequence(x_seq, h_ln_seq, h0, c0, params, *, block_b=None):
    """Run T LSTM cell steps in ONE pallas_call.

    x_seq: [T, B, input_sz], h_ln_seq: [T, B, H] are streamed per step
    (lower-layer inputs); h0/c0: [B, H] are the recurrent carries (h_lt, c).
    Weights / bias / peephole use constant index_maps -> DMA'd once, resident
    in VMEM across all T steps.  Returns (h_seq, c_seq), each [T, B, H].
    """
    T, B, input_sz = x_seq.shape
    hidden = c0.shape[1]
    four_h = 4 * hidden
    if block_b is None:
        block_b = _default_block_b(B)
    grid = (pl.cdiv(B, block_b), T)   # batch "parallel" (megacore), time "arbitrary"

    kernel = functools.partial(_lstm_seq_kernel, hidden=hidden)
    hc_seq = pl.pallas_call(
        kernel,
        out_shape=jax.ShapeDtypeStruct((T, B, 2 * hidden), jnp.float32),
        grid=grid,
        in_specs=[
            pl.BlockSpec((None, block_b, input_sz), lambda b, t: (t, b, 0)),  # x_t
            pl.BlockSpec((None, block_b, hidden),   lambda b, t: (t, b, 0)),  # h_ln_t
            pl.BlockSpec((block_b, hidden),         lambda b, t: (b, 0)),     # h0
            pl.BlockSpec((block_b, hidden),         lambda b, t: (b, 0)),     # c0
            pl.BlockSpec((input_sz, four_h),        lambda b, t: (0, 0)),     # Wx  (resident)
            pl.BlockSpec((hidden, four_h),          lambda b, t: (0, 0)),     # Whn (resident)
            pl.BlockSpec((hidden, four_h),          lambda b, t: (0, 0)),     # Wht (resident)
            pl.BlockSpec((1, four_h),               lambda b, t: (0, 0)),     # bias
            pl.BlockSpec((3, hidden),               lambda b, t: (0, 0)),     # peephole
        ],
        out_specs=pl.BlockSpec((None, block_b, 2 * hidden),
                               lambda b, t: (t, b, 0)),
        scratch_shapes=[pltpu.VMEM((block_b, hidden), jnp.float32),   # h carry
                        pltpu.VMEM((block_b, hidden), jnp.float32)],  # c carry
        compiler_params=pltpu.CompilerParams(
            dimension_semantics=("parallel", "arbitrary")),
    )(x_seq, h_ln_seq, h0, c0,
      params["wx"], params["whn"], params["wht"], params["b"], params["peep"])
    return hc_seq[..., :hidden], hc_seq[..., hidden:]


# ----------------------------- params & reference -----------------------------

def init_params(key, input_sz, hidden_sz):
    """Matches PyTorch nn.Linear init (uniform +/- 1/sqrt(vec_sz)) with the four
    gate weights fused along the output axis in order [input, forget, gate, output],
    and torch.randn-style peephole weights stacked as [ci; cf; co]."""
    vec_sz = input_sz + 2 * hidden_sz
    bound = 1.0 / np.sqrt(vec_sz)
    kw, kb, kp = jax.random.split(key, 3)
    # Stored as [in, out] so the kernel computes x @ W + b (== PyTorch x @ W.T + b).
    w_full = jax.random.uniform(kw, (vec_sz, 4 * hidden_sz), jnp.float32, -bound, bound)
    b_full = jax.random.uniform(kb, (1, 4 * hidden_sz), jnp.float32, -bound, bound)
    peep = jax.random.normal(kp, (3, hidden_sz), jnp.float32)   # [ci, cf, co]
    wx = w_full[:input_sz]
    whn = w_full[input_sz:input_sz + hidden_sz]
    wht = w_full[input_sz + hidden_sz:]
    return dict(wx=wx, whn=whn, wht=wht, b=b_full, peep=peep)


def cast_matmul_weights(params, dtype):
    """Perf mode: store the gate matmul weights in `dtype` (e.g. bf16); bias and
    peephole stay f32 (they only feed the f32 epilogue)."""
    out = dict(params)
    for k in ("wx", "whn", "wht"):
        out[k] = params[k].astype(dtype)
    return out


def lstm_cell_ref(x, h_ln, h_lt, c, params):
    """Pure-JAX reference (mirrors the PyTorch forward)."""
    hidden = c.shape[1]
    xv = jnp.concatenate([x, h_ln, h_lt], axis=-1)
    w = jnp.concatenate([params["wx"], params["whn"], params["wht"]],
                        axis=0).astype(jnp.float32)
    gates = xv @ w + params["b"]
    gi = gates[:, 0 * hidden:1 * hidden]
    gf = gates[:, 1 * hidden:2 * hidden]
    gg = gates[:, 2 * hidden:3 * hidden]
    go = gates[:, 3 * hidden:4 * hidden]
    ci, cf, co = params["peep"][0], params["peep"][1], params["peep"][2]
    i_t = jax.nn.sigmoid(gi + ci * c)
    f_t = jax.nn.sigmoid(gf + cf * c)
    c_t = i_t * jnp.tanh(gg) + f_t * c
    o_t = jax.nn.sigmoid(go + co * c)
    h_t = o_t * jnp.tanh(c_t)
    return h_t, c_t


def _bf16_roundtrip(a):
    return a.astype(jnp.bfloat16).astype(jnp.float32)


# ----------------------------- Main -----------------------------

if __name__ == "__main__":
    INPUT_SZ, HIDDEN_SZ, B, T = 64, 128, 8, 8

    root = jax.random.PRNGKey(0)
    kp, kx, khn, kht, kc, kxs, khs = jax.random.split(root, 7)
    params = init_params(kp, INPUT_SZ, HIDDEN_SZ)

    x = jax.random.normal(kx, (B, INPUT_SZ), jnp.float32)
    h_ln = jax.random.normal(khn, (B, HIDDEN_SZ), jnp.float32)
    h_lt = jax.random.normal(kht, (B, HIDDEN_SZ), jnp.float32)
    c = jax.random.normal(kc, (B, HIDDEN_SZ), jnp.float32)

    # --- 1) single-step cell, f32 weights (exact reference parity) ---
    cell = jax.jit(functools.partial(lstm_cell, params=params))
    h_t, c_t = cell(x, h_ln, h_lt, c)
    jax.block_until_ready((h_t, c_t))

    h_ref, c_ref = lstm_cell_ref(x, h_ln, h_lt, c, params)
    assert h_t.shape == (B, HIDDEN_SZ) and c_t.shape == (B, HIDDEN_SZ)
    assert h_t.dtype == jnp.float32 and c_t.dtype == jnp.float32
    assert bool(jnp.all(jnp.isfinite(h_t))) and bool(jnp.all(jnp.isfinite(c_t)))
    assert np.allclose(np.asarray(h_t), np.asarray(h_ref), rtol=1e-5, atol=1e-5)
    assert np.allclose(np.asarray(c_t), np.asarray(c_ref), rtol=1e-5, atol=1e-5)

    # --- 2) single-step cell, bf16 matmul operands (perf mode) ---
    params_bf16 = cast_matmul_weights(params, jnp.bfloat16)
    cell_bf = jax.jit(functools.partial(lstm_cell, params=params_bf16))
    h_bf, c_bf = cell_bf(x, h_ln, h_lt, c)
    jax.block_until_ready((h_bf, c_bf))

    # Reference on bf16-rounded matmul operands (epilogue in f32), so the only
    # difference left is f32 accumulation order.
    params_rt = dict(params)
    for k in ("wx", "whn", "wht"):
        params_rt[k] = _bf16_roundtrip(params[k])
    h_rbf, c_rbf = lstm_cell_ref(_bf16_roundtrip(x), _bf16_roundtrip(h_ln),
                                 _bf16_roundtrip(h_lt), c, params_rt)
    assert bool(jnp.all(jnp.isfinite(h_bf))) and bool(jnp.all(jnp.isfinite(c_bf)))
    assert np.allclose(np.asarray(h_bf), np.asarray(h_rbf), rtol=5e-3, atol=5e-3)
    assert np.allclose(np.asarray(c_bf), np.asarray(c_rbf), rtol=5e-3, atol=5e-3)

    # --- 3) sequence-resident kernel: T steps, weights loaded once ---
    x_seq = jax.random.normal(kxs, (T, B, INPUT_SZ), jnp.float32)
    hn_seq = jax.random.normal(khs, (T, B, HIDDEN_SZ), jnp.float32)
    seq = jax.jit(functools.partial(lstm_sequence, params=params))
    h_seq, c_seq = seq(x_seq, hn_seq, h_lt, c)
    jax.block_until_ready((h_seq, c_seq))

    assert h_seq.shape == (T, B, HIDDEN_SZ) and c_seq.shape == (T, B, HIDDEN_SZ)
    assert h_seq.dtype == jnp.float32 and c_seq.dtype == jnp.float32
    assert bool(jnp.all(jnp.isfinite(h_seq))) and bool(jnp.all(jnp.isfinite(c_seq)))

    h_prev_ref, c_prev_ref = h_lt, c
    for t in range(T):
        h_prev_ref, c_prev_ref = lstm_cell_ref(x_seq[t], hn_seq[t],
                                               h_prev_ref, c_prev_ref, params)
        assert np.allclose(np.asarray(h_seq[t]), np.asarray(h_prev_ref),
                           rtol=2e-4, atol=2e-4)
        assert np.allclose(np.asarray(c_seq[t]), np.asarray(c_prev_ref),
                           rtol=2e-4, atol=2e-4)

    print("KERNEL_OK")
</pallas_src>

<mosaic_0001>
module attributes {stable_mosaic.version = 11 : i64} {
  func.func @_lstm_cell_kernel(%arg0: i32, %arg1: memref<8x64xf32, #tpu.memory_space<vmem>>, %arg2: memref<8x128xf32, #tpu.memory_space<vmem>>, %arg3: memref<8x128xf32, #tpu.memory_space<vmem>>, %arg4: memref<8x128xf32, #tpu.memory_space<vmem>>, %arg5: memref<64x512xf32, #tpu.memory_space<vmem>>, %arg6: memref<128x512xf32, #tpu.memory_space<vmem>>, %arg7: memref<128x512xf32, #tpu.memory_space<vmem>>, %arg8: memref<1x512xf32, #tpu.memory_space<vmem>>, %arg9: memref<3x128xf32, #tpu.memory_space<vmem>>, %arg10: memref<8x256xf32, #tpu.memory_space<vmem>>) attributes {dimension_semantics = [#tpu.dimension_semantics<parallel>], iteration_bounds = array<i64: 1>, scalar_prefetch = 0 : i64, scratch_operands = 0 : i64, tpu.core_type = #tpu.core_type<tc>, window_params = [{transform_indices = @transform_0, window_bounds = array<i64: 8, 64>}, {transform_indices = @transform_1, window_bounds = array<i64: 8, 128>}, {transform_indices = @transform_2, window_bounds = array<i64: 8, 128>}, {transform_indices = @transform_3, window_bounds = array<i64: 8, 128>}, {pipeline_mode = #tpu.pipeline_mode<synchronous>, transform_indices = @transform_4, window_bounds = array<i64: 64, 512>}, {pipeline_mode = #tpu.pipeline_mode<synchronous>, transform_indices = @transform_5, window_bounds = array<i64: 128, 512>}, {pipeline_mode = #tpu.pipeline_mode<synchronous>, transform_indices = @transform_6, window_bounds = array<i64: 128, 512>}, {pipeline_mode = #tpu.pipeline_mode<synchronous>, transform_indices = @transform_7, window_bounds = array<i64: 1, 512>}, {pipeline_mode = #tpu.pipeline_mode<synchronous>, transform_indices = @transform_8, window_bounds = array<i64: 3, 128>}, {transform_indices = @transform_9, window_bounds = array<i64: 8, 256>}]} {
    %c0 = arith.constant 0 : index
    %c0_0 = arith.constant 0 : index
    %0 = vector.load %arg1[%c0, %c0_0] : memref<8x64xf32, #tpu.memory_space<vmem>>, vector<8x64xf32>
    %c0_1 = arith.constant 0 : index
    %c0_2 = arith.constant 0 : index
    %1 = vector.load %arg2[%c0_1, %c0_2] : memref<8x128xf32, #tpu.memory_space<vmem>>, vector<8x128xf32>
    %c0_3 = arith.constant 0 : index
    %c0_4 = arith.constant 0 : index
    %2 = vector.load %arg3[%c0_3, %c0_4] : memref<8x128xf32, #tpu.memory_space<vmem>>, vector<8x128xf32>
    %c0_5 = arith.constant 0 : index
    %c0_6 = arith.constant 0 : index
    %3 = vector.load %arg4[%c0_5, %c0_6] : memref<8x128xf32, #tpu.memory_space<vmem>>, vector<8x128xf32>
    %c0_7 = arith.constant 0 : index
    %c0_8 = arith.constant 0 : index
    %4 = vector.load %arg5[%c0_7, %c0_8] : memref<64x512xf32, #tpu.memory_space<vmem>>, vector<64x512xf32>
    %c0_9 = arith.constant 0 : index
    %c0_10 = arith.constant 0 : index
    %5 = vector.load %arg6[%c0_9, %c0_10] : memref<128x512xf32, #tpu.memory_space<vmem>>, vector<128x512xf32>
    %c0_11 = arith.constant 0 : index
    %c0_12 = arith.constant 0 : index
    %6 = vector.load %arg7[%c0_11, %c0_12] : memref<128x512xf32, #tpu.memory_space<vmem>>, vector<128x512xf32>
    %c0_13 = arith.constant 0 : index
    %c0_14 = arith.constant 0 : index
    %7 = vector.load %arg8[%c0_13, %c0_14] : memref<1x512xf32, #tpu.memory_space<vmem>>, vector<1x512xf32>
    %c0_15 = arith.constant 0 : index
    %c0_16 = arith.constant 0 : index
    %8 = vector.load %arg9[%c0_15, %c0_16] : memref<3x128xf32, #tpu.memory_space<vmem>>, vector<3x128xf32>
    %cst = arith.constant dense<0.000000e+00> : vector<8x512xf32>
    %9 = tpu.matmul %0, %4, %cst {dimension_numbers = #tpu.dot_dimension_numbers<[1], [0], [0], [1], [0, 0, 1, 1], [], []>} : vector<8x64xf32>, vector<64x512xf32>, vector<8x512xf32> -> vector<8x512xf32>
    %cst_17 = arith.constant dense<0.000000e+00> : vector<8x512xf32>
    %10 = tpu.matmul %1, %5, %cst_17 {dimension_numbers = #tpu.dot_dimension_numbers<[1], [0], [0], [1], [0, 0, 1, 1], [], []>} : vector<8x128xf32>, vector<128x512xf32>, vector<8x512xf32> -> vector<8x512xf32>
    %11 = arith.addf %9, %10 : vector<8x512xf32>
    %cst_18 = arith.constant dense<0.000000e+00> : vector<8x512xf32>
    %12 = tpu.matmul %2, %6, %cst_18 {dimension_numbers = #tpu.dot_dimension_numbers<[1], [0], [0], [1], [0, 0, 1, 1], [], []>} : vector<8x128xf32>, vector<128x512xf32>, vector<8x512xf32> -> vector<8x512xf32>
    %13 = arith.addf %11, %12 : vector<8x512xf32>
    %14 = vector.broadcast %7 : vector<1x512xf32> to vector<8x512xf32>
    %15 = arith.addf %13, %14 : vector<8x512xf32>
    %16 = vector.extract_strided_slice %15 {offsets = [0, 0], sizes = [8, 128], strides = [1, 1]} : vector<8x512xf32> to vector<8x128xf32>
    %17 = vector.extract_strided_slice %15 {offsets = [0, 128], sizes = [8, 128], strides = [1, 1]} : vector<8x512xf32> to vector<8x128xf32>
    %18 = vector.extract_strided_slice %15 {offsets = [0, 256], sizes = [8, 128], strides = [1, 1]} : vector<8x512xf32> to vector<8x128xf32>
    %19 = vector.extract_strided_slice %15 {offsets = [0, 384], sizes = [8, 128], strides = [1, 1]} : vector<8x512xf32> to vector<8x128xf32>
    %20 = vector.extract_strided_slice %8 {offsets = [0, 0], sizes = [1, 128], strides = [1, 1]} : vector<3x128xf32> to vector<1x128xf32>
    %21 = vector.extract_strided_slice %8 {offsets = [1, 0], sizes = [1, 128], strides = [1, 1]} : vector<3x128xf32> to vector<1x128xf32>
    %22 = vector.extract_strided_slice %8 {offsets = [2, 0], sizes = [1, 128], strides = [1, 1]} : vector<3x128xf32> to vector<1x128xf32>
    %23 = vector.broadcast %20 : vector<1x128xf32> to vector<8x128xf32>
    %24 = arith.mulf %23, %3 : vector<8x128xf32>
    %25 = arith.addf %16, %24 : vector<8x128xf32>
    %26 = arith.negf %25 : vector<8x128xf32>
    %27 = math.exp %26 : vector<8x128xf32>
    %cst_19 = arith.constant 1.000000e+00 : f32
    %28 = vector.broadcast %cst_19 : f32 to vector<8x128xf32>
    %29 = arith.addf %28, %27 : vector<8x128xf32>
    %30 = arith.divf %28, %29 : vector<8x128xf32>
    %31 = vector.broadcast %21 : vector<1x128xf32> to vector<8x128xf32>
    %32 = arith.mulf %31, %3 : vector<8x128xf32>
    %33 = arith.addf %17, %32 : vector<8x128xf32>
    %34 = arith.negf %33 : vector<8x128xf32>
    %35 = math.exp %34 : vector<8x128xf32>
    %cst_20 = arith.constant 1.000000e+00 : f32
    %36 = vector.broadcast %cst_20 : f32 to vector<8x128xf32>
    %37 = arith.addf %36, %35 : vector<8x128xf32>
    %38 = arith.divf %36, %37 : vector<8x128xf32>
    %39 = math.tanh %18 : vector<8x128xf32>
    %40 = arith.mulf %30, %39 : vector<8x128xf32>
    %41 = arith.mulf %38, %3 : vector<8x128xf32>
    %42 = arith.addf %40, %41 : vector<8x128xf32>
    %43 = vector.broadcast %22 : vector<1x128xf32> to vector<8x128xf32>
    %44 = arith.mulf %43, %3 : vector<8x128xf32>
    %45 = arith.addf %19, %44 : vector<8x128xf32>
    %46 = arith.negf %45 : vector<8x128xf32>
    %47 = math.exp %46 : vector<8x128xf32>
    %cst_21 = arith.constant 1.000000e+00 : f32
    %48 = vector.broadcast %cst_21 : f32 to vector<8x128xf32>
    %49 = arith.addf %48, %47 : vector<8x128xf32>
    %50 = arith.divf %48, %49 : vector<8x128xf32>
    %51 = math.tanh %42 : vector<8x128xf32>
    %52 = arith.mulf %50, %51 : vector<8x128xf32>
    %c0_22 = arith.constant 0 : index
    %c0_23 = arith.constant 0 : index
    %53 = vector.load %arg10[%c0_22, %c0_23] : memref<8x256xf32, #tpu.memory_space<vmem>>, vector<8x128xf32>
    tpu.vector_store %arg10[%c0_22, %c0_23], %52 {strides = array<i32>} : memref<8x256xf32, #tpu.memory_space<vmem>>, vector<8x128xf32>,
    %c0_24 = arith.constant 0 : index
    %c128 = arith.constant 128 : index
    %54 = vector.load %arg10[%c0_24, %c128] : memref<8x256xf32, #tpu.memory_space<vmem>>, vector<8x128xf32>
    tpu.vector_store %arg10[%c0_24, %c128], %42 {strides = array<i32>} : memref<8x256xf32, #tpu.memory_space<vmem>>, vector<8x128xf32>,
    return
  }
  func.func @transform_0(%arg0: i32) -> (i32, i32) {
    %c0_i32 = arith.constant 0 : i32
    %c0_i32_0 = arith.constant 0 : i32
    return %arg0, %c0_i32 : i32, i32
  }
  func.func @transform_1(%arg0: i32) -> (i32, i32) {
    %c0_i32 = arith.constant 0 : i32
    %c0_i32_0 = arith.constant 0 : i32
    return %arg0, %c0_i32 : i32, i32
  }
  func.func @transform_2(%arg0: i32) -> (i32, i32) {
    %c0_i32 = arith.constant 0 : i32
    %c0_i32_0 = arith.constant 0 : i32
    return %arg0, %c0_i32 : i32, i32
  }
  func.func @transform_3(%arg0: i32) -> (i32, i32) {
    %c0_i32 = arith.constant 0 : i32
    %c0_i32_0 = arith.constant 0 : i32
    return %arg0, %c0_i32 : i32, i32
  }
  func.func @transform_4(%arg0: i32) -> (i32, i32) {
    %c0_i32 = arith.constant 0 : i32
    %c0_i32_0 = arith.constant 0 : i32
    %c0_i32_1 = arith.constant 0 : i32
    return %c0_i32, %c0_i32_0 : i32, i32
  }
  func.func @transform_5(%arg0: i32) -> (i32, i32) {
    %c0_i32 = arith.constant 0 : i32
    %c0_i32_0 = arith.constant 0 : i32
    %c0_i32_1 = arith.constant 0 : i32
    return %c0_i32, %c0_i32_0 : i32, i32
  }
  func.func @transform_6(%arg0: i32) -> (i32, i32) {
    %c0_i32 = arith.constant 0 : i32
    %c0_i32_0 = arith.constant 0 : i32
    %c0_i32_1 = arith.constant 0 : i32
    return %c0_i32, %c0_i32_0 : i32, i32
  }
  func.func @transform_7(%arg0: i32) -> (i32, i32) {
    %c0_i32 = arith.constant 0 : i32
    %c0_i32_0 = arith.constant 0 : i32
    %c0_i32_1 = arith.constant 0 : i32
    return %c0_i32, %c0_i32_0 : i32, i32
  }
  func.func @transform_8(%arg0: i32) -> (i32, i32) {
    %c0_i32 = arith.constant 0 : i32
    %c0_i32_0 = arith.constant 0 : i32
    %c0_i32_1 = arith.constant 0 : i32
    return %c0_i32, %c0_i32_0 : i32, i32
  }
  func.func @transform_9(%arg0: i32) -> (i32, i32) {
    %c0_i32 = arith.constant 0 : i32
    %c0_i32_0 = arith.constant 0 : i32
    return %arg0, %c0_i32 : i32, i32
  }
}

</mosaic_0001>

<bundles_post_ra>
// kernel: lstm_cell.1
= control target key start
LH: loop header
LB: loop body
LE: loop exit
PB: predicated region body
PF: predicated region fallthrough
CT: control target
= control target key end

     0   :  { %14 = vsyncpa [#allocation3], 0  ;;  %s1010_s0 = inlined_call_operand.hbm [shape: f32[8,64], index: 0, kind: input, shape index: {}]   ;;  %s1011_s1 = inlined_call_operand.hbm [shape: f32[8,128], index: 1, kind: input, shape index: {}]   ;;  %s1012_s2 = inlined_call_operand.hbm [shape: f32[8,128], index: 2, kind: input, shape index: {}]   ;;  %s1013_s3 = inlined_call_operand.hbm [shape: f32[8,128], index: 3, kind: input, shape index: {}]   ;;  %s1014_s4 = inlined_call_operand.hbm [shape: f32[64,512], index: 4, kind: input, shape index: {}]   ;;  %s1015_s5 = inlined_call_operand.hbm [shape: f32[128,512], index: 5, kind: input, shape index: {}]   ;;  %s1016_s6 = inlined_call_operand.hbm [shape: f32[128,512], index: 6, kind: input, shape index: {}]   ;;  %s1017_s7 = inlined_call_operand.hbm [shape: f32[1,512], index: 7, kind: input, shape index: {}]   ;;  %s1018_s8 = inlined_call_operand.vmem [shape: f32[3,128], index: 8, kind: input, shape index: {}]   ;;  %s1019_s9 = inlined_call_operand.vmem [shape: f32[8,256], index: 9, kind: output, shape index: {}]  }
   0x1   :  { %15 = vsyncpa [#allocation5], 0 }
   0x2   :  { %16 = vsyncpa [#allocation8], 0 }
   0x3   :  { %17 = vsyncpa [#allocation11], 0  ;;  %s35_s11 = sshll.u32 %s1011_s1, 4  ;;  %s36_s11 = int_to_ptr.hbm [resolvable:$true] %s35_s11 }
   0x4   :  { %18 = vsyncpa [#allocation14], 0  ;;  %s892_s12 = smov [#allocation4]   ;;  %s57_s16 = sshll.u32 %s1013_s3, 4  ;;  %s58_s16 = int_to_ptr.hbm [resolvable:$true] %s57_s16 }
   0x5   :  { %s37_s13 = sshll.u32 %s892_s12, 4  ;;  %s893_s17 = smov [#allocation7]   ;;  %s38_s13 = int_to_ptr.vmem [resolvable:$true] %s37_s13 }
   0x6   :  { %40 = dma.hbm_to_vmem [thread:$0]  %s36_s11, 128, %s38_s13, [#allocation5]  }
   0x7   :  { %s59_s18 = sshll.u32 %s893_s17, 4  ;;  %s80_s21 = sshll.u32 %s1015_s5, 4  ;;  %s60_s18 = int_to_ptr.vmem [resolvable:$true] %s59_s18  ;;  %s81_s21 = int_to_ptr.hbm [resolvable:$true] %s80_s21 }
   0x8   :  { %62 = dma.hbm_to_vmem [thread:$0]  %s58_s16, 128, %s60_s18, [#allocation8]  }
   0x9   :  { %s894_s1 = smov [#allocation10]   ;;  %s24_s25 = sshll.u32 %s1010_s0, 4  ;;  %s25_s25 = int_to_ptr.hbm [resolvable:$true] %s24_s25 }
   0xa   :  { %s82_s22 = sshll.u32 %s894_s1, 4  ;;  %s895_s26 = smov 512   ;;  %s83_s22 = int_to_ptr.vmem [resolvable:$true] %s82_s22 }
   0xb   :  { %s896_s3 = smov 32   ;;  %s897_s27 = smov [#allocation2]  }
   0xc   :  { %88 = dma.hbm_to_vmem [thread:$0]  %s81_s21, 8192, %s83_s22, [#allocation11], %s895_s26, %s895_s26, %s896_s3  }
   0xd   :  { %s26_s28 = sshll.u32 %s897_s27, 4  ;;  %s46_s5 = sshll.u32 %s1012_s2, 4  ;;  %s27_s28 = int_to_ptr.vmem [resolvable:$true] %s26_s28  ;;  %s47_s5 = int_to_ptr.hbm [resolvable:$true] %s46_s5 }
   0xe   :  { %29 = dma.hbm_to_vmem [thread:$0]  %s25_s25, 128, %s27_s28, [#allocation3]  }
   0xf   :  { %s67_s0 = sshll.u32 %s1014_s4, 4  ;;  %s898_s12 = smov [#allocation6]   ;;  %s68_s0 = int_to_ptr.hbm [resolvable:$true] %s67_s0 }
  0x10   :  { %s48_s13 = sshll.u32 %s898_s12, 4  ;;  %s899_s14 = smov [#allocation9]   ;;  %s49_s13 = int_to_ptr.vmem [resolvable:$true] %s48_s13 }
  0x11   :  { %51 = dma.hbm_to_vmem [thread:$0]  %s47_s5, 128, %s49_s13, [#allocation5]  }
  0x12   :  { %s69_s15 = sshll.u32 %s899_s14, 4  ;;  %s93_s18 = sshll.u32 %s1016_s6, 4  ;;  %s70_s15 = int_to_ptr.vmem [resolvable:$true] %s69_s15  ;;  %s94_s18 = int_to_ptr.hbm [resolvable:$true] %s93_s18 }
  0x13   :  { %75 = dma.hbm_to_vmem [thread:$0]  %s68_s0, 4096, %s70_s15, [#allocation8], %s895_s26, %s895_s26, %s896_s3  }
  0x14   :  { %s107_s4 = sshll.u32 %s1017_s7, 4  ;;  %s900_s20 = smov [#allocation12]   ;;  %s108_s4 = int_to_ptr.hbm [resolvable:$true] %s107_s4 }
  0x15   :  { %s95_s21 = sshll.u32 %s900_s20, 4  ;;  %s901_s1 = smov [#allocation13]   ;;  %s96_s21 = int_to_ptr.vmem [resolvable:$true] %s95_s21 }
  0x16   :  { %101 = dma.hbm_to_vmem [thread:$0]  %s94_s18, 8192, %s96_s21, [#allocation11], %s895_s26, %s895_s26, %s896_s3  }
  0x17   :  { %s109_s6 = sshll.u32 %s901_s1, 4  ;;  %s110_s6 = int_to_ptr.vmem [resolvable:$true] %s109_s6 }
  0x18   :  { %112 = dma.hbm_to_vmem [thread:$0]  %s108_s4, 64, %s110_s6, [#allocation14]  }
  0x19   :  { %882 = dma.done.wait [#allocation3], 128  }
  0x1a   :  { %883 = vsyncadd [#allocation3], 4294967168 }
  0x1b   :  { %884 = dma.done.wait [#allocation5], 256  }
  0x1c   :  { %885 = vsyncadd [#allocation5], 4294967040 }
  0x1d   :  { %886 = dma.done.wait [#allocation8], 4224  }
  0x1e   :  { %887 = vsyncadd [#allocation8], 4294963072 }
  0x1f   :  { %888 = dma.done.wait [#allocation11], 16384  }
  0x20   :  { %889 = vsyncadd [#allocation11], 4294950912 }
  0x21   :  { %890 = dma.done.wait [#allocation14], 64  }
  0x22   :  { %891 = vsyncadd [#allocation14], 4294967232  ;;  %v243_v0 = vld [vmem:[#allocation10 + $0x1e0] sm:$0xff]  ;;  %v244_v1 = vld [vmem:[#allocation10 + $0x1e8] sm:$0xff]  ;;  %vm393_vm0 = vcmask 523264  }
  0x23   :  { %v245_v2 = vld [vmem:[#allocation10 + $0x1f0] sm:$0xff]  ;;  %313 = vmatpush.msra.mxu0 %v243_v0  ;;  %333 = vmatpush.msra.mxu1 %v244_v1  ;;  %v246_v3 = vld [vmem:[#allocation10 + $0x1f8] sm:$0xff]  ;;  %v239_v4 = vld [vmem:[#allocation10 + $0x1c0] sm:$0xff] }
  0x24   :  { %v240_v5 = vld [vmem:[#allocation10 + $0x1c8] sm:$0xff]  ;;  %353 = vmatpush.msra.mxu2 %v245_v2  ;;  %373 = vmatpush.msra.mxu3 %v246_v3  ;;  %v241_v6 = vld [vmem:[#allocation10 + $0x1d0] sm:$0xff]  ;;  %v242_v7 = vld [vmem:[#allocation10 + $0x1d8] sm:$0xff] }
  0x25   :  { %v235_v8 = vld [vmem:[#allocation10 + $0x1a0] sm:$0xff]  ;;  %314 = vmatpush.msra.mxu0 %v239_v4  ;;  %334 = vmatpush.msra.mxu1 %v240_v5  ;;  %v236_v9 = vld [vmem:[#allocation10 + $0x1a8] sm:$0xff]  ;;  %v237_v10 = vld [vmem:[#allocation10 + $0x1b0] sm:$0xff] }
  0x26   :  { %v238_v11 = vld [vmem:[#allocation10 + $0x1b8] sm:$0xff]  ;;  %354 = vmatpush.msra.mxu2 %v241_v6  ;;  %374 = vmatpush.msra.mxu3 %v242_v7  ;;  %v231_v12 = vld [vmem:[#allocation10 + $0x180] sm:$0xff]  ;;  %v232_v13 = vld [vmem:[#allocation10 + $0x188] sm:$0xff] }
  0x27   :  { %315 = vmatpush.msra.mxu0 %v235_v8  ;;  %335 = vmatpush.msra.mxu1 %v236_v9  ;;  %v233_v14 = vld [vmem:[#allocation10 + $0x190] sm:$0xff]  ;;  %v234_v15 = vld [vmem:[#allocation10 + $0x198] sm:$0xff]  ;;  %v227_v16 = vld [vmem:[#allocation10 + $0x160] sm:$0xff] }
  0x28   :  { %355 = vmatpush.msra.mxu2 %v237_v10  ;;  %375 = vmatpush.msra.mxu3 %v238_v11  ;;  %v228_v17 = vld [vmem:[#allocation10 + $0x168] sm:$0xff]  ;;  %v229_v18 = vld [vmem:[#allocation10 + $0x170] sm:$0xff]  ;;  %v230_v19 = vld [vmem:[#allocation10 + $0x178] sm:$0xff] }
  0x29   :  { %316 = vmatpush.msra.mxu0 %v231_v12  ;;  %336 = vmatpush.msra.mxu1 %v232_v13  ;;  %v223_v20 = vld [vmem:[#allocation10 + $0x140] sm:$0xff]  ;;  %v224_v21 = vld [vmem:[#allocation10 + $0x148] sm:$0xff]  ;;  %v225_v22 = vld [vmem:[#allocation10 + $0x150] sm:$0xff] }
  0x2a   :  { %356 = vmatpush.msra.mxu2 %v233_v14  ;;  %376 = vmatpush.msra.mxu3 %v234_v15  ;;  %v226_v23 = vld [vmem:[#allocation10 + $0x158] sm:$0xff]  ;;  %v219_v24 = vld [vmem:[#allocation10 + $0x120] sm:$0xff]  ;;  %v220_v25 = vld [vmem:[#allocation10 + $0x128] sm:$0xff] }
  0x2b   :  { %317 = vmatpush.msra.mxu0 %v227_v16  ;;  %337 = vmatpush.msra.mxu1 %v228_v17  ;;  %v221_v26 = vld [vmem:[#allocation10 + $0x130] sm:$0xff]  ;;  %v222_v27 = vld [vmem:[#allocation10 + $0x138] sm:$0xff]  ;;  %v215_v28 = vld [vmem:[#allocation10 + $0x100] sm:$0xff] }
  0x2c   :  { %357 = vmatpush.msra.mxu2 %v229_v18  ;;  %377 = vmatpush.msra.mxu3 %v230_v19  ;;  %v216_v29 = vld [vmem:[#allocation10 + $0x108] sm:$0xff]  ;;  %v217_v30 = vld [vmem:[#allocation10 + $0x110] sm:$0xff]  ;;  %v218_v31 = vld [vmem:[#allocation10 + $0x118] sm:$0xff] }
  0x2d   :  { %318 = vmatpush.msra.mxu0 %v223_v20  ;;  %338 = vmatpush.msra.mxu1 %v224_v21  ;;  %v211_v32 = vld [vmem:[#allocation10 + $0xe0] sm:$0xff]  ;;  %v212_v33 = vld [vmem:[#allocation10 + $0xe8] sm:$0xff]  ;;  %v213_v34 = vld [vmem:[#allocation10 + $0xf0] sm:$0xff] }
  0x2e   :  { %358 = vmatpush.msra.mxu2 %v225_v22  ;;  %378 = vmatpush.msra.mxu3 %v226_v23  ;;  %v214_v35 = vld [vmem:[#allocation10 + $0xf8] sm:$0xff]  ;;  %v207_v36 = vld [vmem:[#allocation10 + $0xc0] sm:$0xff]  ;;  %v208_v37 = vld [vmem:[#allocation10 + $0xc8] sm:$0xff] }
  0x2f   :  { %319 = vmatpush.msra.mxu0 %v219_v24  ;;  %339 = vmatpush.msra.mxu1 %v220_v25  ;;  %v209_v38 = vld [vmem:[#allocation10 + $0xd0] sm:$0xff]  ;;  %v210_v39 = vld [vmem:[#allocation10 + $0xd8] sm:$0xff]  ;;  %v203_v40 = vld [vmem:[#allocation10 + $0xa0] sm:$0xff] }
  0x30   :  { %359 = vmatpush.msra.mxu2 %v221_v26  ;;  %379 = vmatpush.msra.mxu3 %v222_v27  ;;  %v204_v41 = vld [vmem:[#allocation10 + $0xa8] sm:$0xff]  ;;  %v205_v42 = vld [vmem:[#allocation10 + $0xb0] sm:$0xff]  ;;  %v206_v43 = vld [vmem:[#allocation10 + $0xb8] sm:$0xff] }
  0x31   :  { %320 = vmatpush.msra.mxu0 %v215_v28  ;;  %340 = vmatpush.msra.mxu1 %v216_v29  ;;  %v199_v44 = vld [vmem:[#allocation10 + $0x80] sm:$0xff]  ;;  %v200_v45 = vld [vmem:[#allocation10 + $0x88] sm:$0xff]  ;;  %v201_v46 = vld [vmem:[#allocation10 + $0x90] sm:$0xff] }
  0x32   :  { %360 = vmatpush.msra.mxu2 %v217_v30  ;;  %380 = vmatpush.msra.mxu3 %v218_v31  ;;  %v202_v47 = vld [vmem:[#allocation10 + $0x98] sm:$0xff]  ;;  %v195_v48 = vld [vmem:[#allocation10 + $0x60] sm:$0xff]  ;;  %v196_v49 = vld [vmem:[#allocation10 + $0x68] sm:$0xff] }
  0x33   :  { %321 = vmatpush.msra.mxu0 %v211_v32  ;;  %341 = vmatpush.msra.mxu1 %v212_v33  ;;  %v197_v50 = vld [vmem:[#allocation10 + $0x70] sm:$0xff]  ;;  %v198_v51 = vld [vmem:[#allocation10 + $0x78] sm:$0xff]  ;;  %v191_v52 = vld [vmem:[#allocation10 + $0x40] sm:$0xff] }
  0x34   :  { %361 = vmatpush.msra.mxu2 %v213_v34  ;;  %381 = vmatpush.msra.mxu3 %v214_v35  ;;  %v192_v53 = vld [vmem:[#allocation10 + $0x48] sm:$0xff]  ;;  %v193_v54 = vld [vmem:[#allocation10 + $0x50] sm:$0xff]  ;;  %v194_v55 = vld [vmem:[#allocation10 + $0x58] sm:$0xff] }
  0x35   :  { %322 = vmatpush.msra.mxu0 %v207_v36  ;;  %342 = vmatpush.msra.mxu1 %v208_v37  ;;  %v187_v56 = vld [vmem:[#allocation10 + $0x20] sm:$0xff]  ;;  %v188_v57 = vld [vmem:[#allocation10 + $0x28] sm:$0xff]  ;;  %v189_v58 = vld [vmem:[#allocation10 + $0x30] sm:$0xff] }
  0x36   :  { %362 = vmatpush.msra.mxu2 %v209_v38  ;;  %382 = vmatpush.msra.mxu3 %v210_v39  ;;  %v190_v59 = vld [vmem:[#allocation10 + $0x38] sm:$0xff]  ;;  %v183_v60 = vld [vmem:[#allocation10] sm:$0xff]  ;;  %v184_v61 = vld [vmem:[#allocation10 + $0x8] sm:$0xff] }
  0x37   :  { %323 = vmatpush.msra.mxu0 %v203_v40  ;;  %343 = vmatpush.msra.mxu1 %v204_v41  ;;  %v185_v62 = vld [vmem:[#allocation10 + $0x10] sm:$0xff]  ;;  %v186_v63 = vld [vmem:[#allocation10 + $0x18] sm:$0xff]  ;;  %v179_v0 = vld [vmem:[#allocation9 + $0xe0] sm:$0xff] }
  0x38   :  { %363 = vmatpush.msra.mxu2 %v205_v42  ;;  %383 = vmatpush.msra.mxu3 %v206_v43  ;;  %v180_v1 = vld [vmem:[#allocation9 + $0xe8] sm:$0xff]  ;;  %v181_v2 = vld [vmem:[#allocation9 + $0xf0] sm:$0xff]  ;;  %v182_v3 = vld [vmem:[#allocation9 + $0xf8] sm:$0xff] }
  0x39   :  { %324 = vmatpush.msra.mxu0 %v199_v44  ;;  %344 = vmatpush.msra.mxu1 %v200_v45  ;;  %v175_v4 = vld [vmem:[#allocation9 + $0xc0] sm:$0xff]  ;;  %v176_v5 = vld [vmem:[#allocation9 + $0xc8] sm:$0xff]  ;;  %v177_v6 = vld [vmem:[#allocation9 + $0xd0] sm:$0xff] }
  0x3a   :  { %364 = vmatpush.msra.mxu2 %v201_v46  ;;  %384 = vmatpush.msra.mxu3 %v202_v47  ;;  %v178_v7 = vld [vmem:[#allocation9 + $0xd8] sm:$0xff]  ;;  %v171_v8 = vld [vmem:[#allocation9 + $0xa0] sm:$0xff]  ;;  %v172_v9 = vld [vmem:[#allocation9 + $0xa8] sm:$0xff] }
  0x3b   :  { %325 = vmatpush.msra.mxu0 %v195_v48  ;;  %345 = vmatpush.msra.mxu1 %v196_v49  ;;  %v173_v10 = vld [vmem:[#allocation9 + $0xb0] sm:$0xff]  ;;  %v174_v11 = vld [vmem:[#allocation9 + $0xb8] sm:$0xff]  ;;  %v167_v12 = vld [vmem:[#allocation9 + $0x80] sm:$0xff] }
  0x3c   :  { %365 = vmatpush.msra.mxu2 %v197_v50  ;;  %385 = vmatpush.msra.mxu3 %v198_v51  ;;  %v168_v13 = vld [vmem:[#allocation9 + $0x88] sm:$0xff]  ;;  %v169_v14 = vld [vmem:[#allocation9 + $0x90] sm:$0xff]  ;;  %v170_v15 = vld [vmem:[#allocation9 + $0x98] sm:$0xff] }
  0x3d   :  { %326 = vmatpush.msra.mxu0 %v191_v52  ;;  %346 = vmatpush.msra.mxu1 %v192_v53  ;;  %v148_v16 = vld [vmem:[#allocation4] sm:$0xff]  ;;  %v163_v17 = vld [vmem:[#allocation9 + $0x60] sm:$0xff]  ;;  %v165_v19 = vld [vmem:[#allocation9 + $0x70] sm:$0xff] }
  0x3e   :  { %366 = vmatpush.msra.mxu2 %v193_v54  ;;  %386 = vmatpush.msra.mxu3 %v194_v55  ;;  %v164_v18 = vld [vmem:[#allocation9 + $0x68] sm:$0xff]  ;;  %v166_v20 = vld [vmem:[#allocation9 + $0x78] sm:$0xff]  ;;  %v159_v21 = vld [vmem:[#allocation9 + $0x40] sm:$0xff] }
  0x3f   :  { %327 = vmatpush.msra.mxu0 %v187_v56  ;;  %347 = vmatpush.msra.mxu1 %v188_v57  ;;  %v160_v22 = vld [vmem:[#allocation9 + $0x48] sm:$0xff]  ;;  %v161_v23 = vld [vmem:[#allocation9 + $0x50] sm:$0xff]  ;;  %v162_v24 = vld [vmem:[#allocation9 + $0x58] sm:$0xff] }
  0x40   :  { %367 = vmatpush.msra.mxu2 %v189_v58  ;;  %387 = vmatpush.msra.mxu3 %v190_v59  ;;  %v155_v25 = vld [vmem:[#allocation9 + $0x20] sm:$0xff]  ;;  %v156_v26 = vld [vmem:[#allocation9 + $0x28] sm:$0xff]  ;;  %v157_v27 = vld [vmem:[#allocation9 + $0x30] sm:$0xff] }
  0x41   :  { %328 = vmatpush.msra.mxu0 %v183_v60  ;;  %348 = vmatpush.msra.mxu1 %v184_v61  ;;  %v158_v28 = vld [vmem:[#allocation9 + $0x38] sm:$0xff]  ;;  %v151_v29 = vld [vmem:[#allocation9] sm:$0xff]  ;;  %v152_v30 = vld [vmem:[#allocation9 + $0x8] sm:$0xff] }
  0x42   :  { %368 = vmatpush.msra.mxu2 %v185_v62  ;;  %388 = vmatpush.msra.mxu3 %v186_v63  ;;  %v153_v31 = vld [vmem:[#allocation9 + $0x10] sm:$0xff]  ;;  %v154_v32 = vld [vmem:[#allocation9 + $0x18] sm:$0xff]  ;;  %v985_v33 = vld [vmem:[#allocation2] sm:$0xff] }
  0x43   :  { %405 = vmatpush.msrb.mxu0 %v179_v0  ;;  %425 = vmatpush.msrb.mxu1 %v180_v1  ;;  %v307_v34 = vld [vmem:[#allocation12 + $0x1e0] sm:$0xff]  ;;  %v308_v35 = vld [vmem:[#allocation12 + $0x1e8] sm:$0xff]  ;;  %v309_v36 = vld [vmem:[#allocation12 + $0x1f0] sm:$0xff] }
  0x44   :  { %445 = vmatpush.msrb.mxu2 %v181_v2  ;;  %465 = vmatpush.msrb.mxu3 %v182_v3  ;;  %v310_v37 = vld [vmem:[#allocation12 + $0x1f8] sm:$0xff]  ;;  %v303_v38 = vld [vmem:[#allocation12 + $0x1c0] sm:$0xff]  ;;  %v304_v39 = vld [vmem:[#allocation12 + $0x1c8] sm:$0xff] }
  0x45   :  { %406 = vmatpush.msrb.mxu0 %v175_v4  ;;  %426 = vmatpush.msrb.mxu1 %v176_v5  ;;  %v305_v40 = vld [vmem:[#allocation12 + $0x1d0] sm:$0xff]  ;;  %v306_v41 = vld [vmem:[#allocation12 + $0x1d8] sm:$0xff]  ;;  %v299_v42 = vld [vmem:[#allocation12 + $0x1a0] sm:$0xff] }
  0x46   :  { %446 = vmatpush.msrb.mxu2 %v177_v6  ;;  %466 = vmatpush.msrb.mxu3 %v178_v7  ;;  %v300_v43 = vld [vmem:[#allocation12 + $0x1a8] sm:$0xff]  ;;  %v301_v44 = vld [vmem:[#allocation12 + $0x1b0] sm:$0xff]  ;;  %v302_v45 = vld [vmem:[#allocation12 + $0x1b8] sm:$0xff] }
  0x47   :  { %407 = vmatpush.msrb.mxu0 %v171_v8  ;;  %427 = vmatpush.msrb.mxu1 %v172_v9  ;;  %v295_v46 = vld [vmem:[#allocation12 + $0x180] sm:$0xff]  ;;  %v296_v47 = vld [vmem:[#allocation12 + $0x188] sm:$0xff]  ;;  %v297_v48 = vld [vmem:[#allocation12 + $0x190] sm:$0xff] }
  0x48   :  { %447 = vmatpush.msrb.mxu2 %v173_v10  ;;  %467 = vmatpush.msrb.mxu3 %v174_v11  ;;  %v298_v49 = vld [vmem:[#allocation12 + $0x198] sm:$0xff]  ;;  %v291_v50 = vld [vmem:[#allocation12 + $0x160] sm:$0xff]  ;;  %v292_v51 = vld [vmem:[#allocation12 + $0x168] sm:$0xff] }
  0x49   :  { %408 = vmatpush.msrb.mxu0 %v167_v12  ;;  %428 = vmatpush.msrb.mxu1 %v168_v13  ;;  %v293_v52 = vld [vmem:[#allocation12 + $0x170] sm:$0xff]  ;;  %v294_v53 = vld [vmem:[#allocation12 + $0x178] sm:$0xff]  ;;  %v287_v54 = vld [vmem:[#allocation12 + $0x140] sm:$0xff] }
  0x4a   :  { %448 = vmatpush.msrb.mxu2 %v169_v14  ;;  %468 = vmatpush.msrb.mxu3 %v170_v15  ;;  %v288_v55 = vld [vmem:[#allocation12 + $0x148] sm:$0xff]  ;;  %v289_v56 = vld [vmem:[#allocation12 + $0x150] sm:$0xff]  ;;  %v290_v57 = vld [vmem:[#allocation12 + $0x158] sm:$0xff] }
  0x4b   :  { %329 = vmatmul.f32.vlgmr.msra.gmra.mxu0 %v148_v16  ;;  %349 = vmatmul.f32.vlgmr.msra.gmra.mxu1 %v148_v16  ;;  %v283_v58 = vld [vmem:[#allocation12 + $0x120] sm:$0xff]  ;;  %v284_v59 = vld [vmem:[#allocation12 + $0x128] sm:$0xff]  ;;  %v285_v60 = vld [vmem:[#allocation12 + $0x130] sm:$0xff] }
  0x4c   :  { %409 = vmatpush.msrb.mxu0 %v163_v17  ;;  %429 = vmatpush.msrb.mxu1 %v164_v18  ;;  %v286_v61 = vld [vmem:[#allocation12 + $0x138] sm:$0xff]  ;;  %v279_v62 = vld [vmem:[#allocation12 + $0x100] sm:$0xff]  ;;  %v280_v63 = vld [vmem:[#allocation12 + $0x108] sm:$0xff] }
  0x4d   :  { %449 = vmatpush.msrb.mxu2 %v165_v19  ;;  %469 = vmatpush.msrb.mxu3 %v166_v20  ;;  %v281_v0 = vld [vmem:[#allocation12 + $0x110] sm:$0xff]  ;;  %v282_v1 = vld [vmem:[#allocation12 + $0x118] sm:$0xff]  ;;  %v275_v2 = vld [vmem:[#allocation12 + $0xe0] sm:$0xff] }
  0x4e   :  { %410 = vmatpush.msrb.mxu0 %v159_v21  ;;  %430 = vmatpush.msrb.mxu1 %v160_v22  ;;  %v276_v3 = vld [vmem:[#allocation12 + $0xe8] sm:$0xff]  ;;  %v277_v4 = vld [vmem:[#allocation12 + $0xf0] sm:$0xff]  ;;  %v278_v5 = vld [vmem:[#allocation12 + $0xf8] sm:$0xff] }
  0x4f   :  { %450 = vmatpush.msrb.mxu2 %v161_v23  ;;  %470 = vmatpush.msrb.mxu3 %v162_v24  ;;  %v271_v6 = vld [vmem:[#allocation12 + $0xc0] sm:$0xff]  ;;  %v272_v7 = vld [vmem:[#allocation12 + $0xc8] sm:$0xff]  ;;  %v273_v8 = vld [vmem:[#allocation12 + $0xd0] sm:$0xff] }
  0x50   :  { %389 = vmatmul.f32.vlgmr.msra.gmra.mxu3 %v148_v16  ;;  %411 = vmatpush.msrb.mxu0 %v155_v25  ;;  %v274_v9 = vld [vmem:[#allocation12 + $0xd8] sm:$0xff]  ;;  %v267_v10 = vld [vmem:[#allocation12 + $0xa0] sm:$0xff]  ;;  %v268_v11 = vld [vmem:[#allocation12 + $0xa8] sm:$0xff] }
  0x51   :  { %431 = vmatpush.msrb.mxu1 %v156_v26  ;;  %451 = vmatpush.msrb.mxu2 %v157_v27  ;;  %v269_v12 = vld [vmem:[#allocation12 + $0xb0] sm:$0xff]  ;;  %v270_v13 = vld [vmem:[#allocation12 + $0xb8] sm:$0xff]  ;;  %v263_v14 = vld [vmem:[#allocation12 + $0x80] sm:$0xff] }
  0x52   :  { %471 = vmatpush.msrb.mxu3 %v158_v28  ;;  %412 = vmatpush.msrb.mxu0 %v151_v29  ;;  %v264_v15 = vld [vmem:[#allocation12 + $0x88] sm:$0xff]  ;;  %v266_v17 = vld [vmem:[#allocation12 + $0x98] sm:$0xff]  ;;  %v259_v18 = vld [vmem:[#allocation12 + $0x60] sm:$0xff] }
  0x53   :  { %432 = vmatpush.msrb.mxu1 %v152_v30  ;;  %452 = vmatpush.msrb.mxu2 %v153_v31  ;;  %v260_v19 = vld [vmem:[#allocation12 + $0x68] sm:$0xff]  ;;  %v261_v20 = vld [vmem:[#allocation12 + $0x70] sm:$0xff]  ;;  %v262_v21 = vld [vmem:[#allocation12 + $0x78] sm:$0xff] }
  0x54   :  { %472 = vmatpush.msrb.mxu3 %v154_v32  ;;  %369 = vmatmul.f32.vlgmr.msra.gmra.mxu2 %v148_v16  ;;  %v265_v16 = vld [vmem:[#allocation12 + $0x90] sm:$0xff]  ;;  %v255_v22 = vld [vmem:[#allocation12 + $0x40] sm:$0xff]  ;;  %v256_v23 = vld [vmem:[#allocation12 + $0x48] sm:$0xff] }
  0x55   :  { %657 = vmatmul.msk.f32.vlgmr.msrb.gmra.mxu0 %vm393_vm0, %v985_v33  ;;  %658 = vmatmul.msk.f32.vlgmr.msrb.gmra.mxu1 %vm393_vm0, %v985_v33  ;;  %v257_v24 = vld [vmem:[#allocation12 + $0x50] sm:$0xff]  ;;  %v258_v25 = vld [vmem:[#allocation12 + $0x58] sm:$0xff]  ;;  %v251_v26 = vld [vmem:[#allocation12 + $0x20] sm:$0xff] }
  0x56   :  { %477 = vmatpush.msra.mxu0 %v307_v34  ;;  %497 = vmatpush.msra.mxu1 %v308_v35  ;;  %v252_v27 = vld [vmem:[#allocation12 + $0x28] sm:$0xff]  ;;  %v253_v28 = vld [vmem:[#allocation12 + $0x30] sm:$0xff]  ;;  %v254_v29 = vld [vmem:[#allocation12 + $0x38] sm:$0xff] }
  0x57   :  { %517 = vmatpush.msra.mxu2 %v309_v36  ;;  %537 = vmatpush.msra.mxu3 %v310_v37  ;;  %v247_v30 = vld [vmem:[#allocation12] sm:$0xff]  ;;  %v248_v31 = vld [vmem:[#allocation12 + $0x8] sm:$0xff]  ;;  %v249_v32 = vld [vmem:[#allocation12 + $0x10] sm:$0xff] }
  0x58   :  { %478 = vmatpush.msra.mxu0 %v303_v38  ;;  %498 = vmatpush.msra.mxu1 %v304_v39  ;;  %v149_v34 = vld [vmem:[#allocation6] sm:$0xff] }
  0x59   :  { %518 = vmatpush.msra.mxu2 %v305_v40  ;;  %538 = vmatpush.msra.mxu3 %v306_v41  ;;  %v312_v40 = vld [vmem:[%s1018_s8] sm:$0x7] }
  0x5a   :  { %479 = vmatpush.msra.mxu0 %v299_v42  ;;  %499 = vmatpush.msra.mxu1 %v300_v43  ;;  %v311_v41 = vld [vmem:[#allocation13] sm:$0xf]  ;;  %v574_v42 = vperm.slane %v312_v40, 0  ;;  %v596_v43 = vperm.slane %v312_v40, 1 }
  0x5b   :  { %519 = vmatpush.msra.mxu2 %v301_v44  ;;  %539 = vmatpush.msra.mxu3 %v302_v45  ;;  %v998_v44 = vld [vmem:[#allocation7] sm:$0xff] }
  0x5c   :  { %660 = vmatmul.msk.f32.vlgmr.msrb.gmra.mxu3 %vm393_vm0, %v985_v33  ;;  %480 = vmatpush.msra.mxu0 %v295_v46 }
  0x5d   :  { %500 = vmatpush.msra.mxu1 %v296_v47  ;;  %520 = vmatpush.msra.mxu2 %v297_v48 }
  0x5e   :  { %540 = vmatpush.msra.mxu3 %v298_v49  ;;  %481 = vmatpush.msra.mxu0 %v291_v50  ;;  %v562_v49 = vperm.slane %v311_v41, 0  ;;  %v563_v50 = vperm.slane %v311_v41, 1 }
  0x5f   :  { %501 = vmatpush.msra.mxu1 %v292_v51  ;;  %521 = vmatpush.msra.mxu2 %v293_v52 }
  0x60   :  { %541 = vmatpush.msra.mxu3 %v294_v53  ;;  %482 = vmatpush.msra.mxu0 %v287_v54  ;;  %v575_v54 = vmul.f32 %v574_v42, %v998_v44 }
  0x61   :  { %502 = vmatpush.msra.mxu1 %v288_v55  ;;  %522 = vmatpush.msra.mxu2 %v289_v56  ;;  %v597_v56 = vmul.f32 %v596_v43, %v998_v44 }
  0x62   :  { %542 = vmatpush.msra.mxu3 %v290_v57  ;;  %483 = vmatpush.msra.mxu0 %v283_v58 }
  0x63   :  { %503 = vmatpush.msra.mxu1 %v284_v59  ;;  %523 = vmatpush.msra.mxu2 %v285_v60  ;;  %v622_v59 = vperm.slane %v312_v40, 2 }
  0x64   :  { %543 = vmatpush.msra.mxu3 %v286_v61  ;;  %484 = vmatpush.msra.mxu0 %v279_v62 }
  0x65   :  { %504 = vmatpush.msra.mxu1 %v280_v63  ;;  %524 = vmatpush.msra.mxu2 %v281_v0  ;;  %v565_v63 = vperm.slane %v311_v41, 3 }
  0x66   :  { %544 = vmatpush.msra.mxu3 %v282_v1  ;;  %485 = vmatpush.msra.mxu0 %v275_v2 }
  0x67   :  { %505 = vmatpush.msra.mxu1 %v276_v3  ;;  %525 = vmatpush.msra.mxu2 %v277_v4  ;;  %v623_v4 = vmul.f32 %v622_v59, %v998_v44 }
  0x68   :  { %545 = vmatpush.msra.mxu3 %v278_v5  ;;  %659 = vmatmul.msk.f32.vlgmr.msrb.gmra.mxu2 %vm393_vm0, %v985_v33  ;;  %v250_v33 = vld [vmem:[#allocation12 + $0x18] sm:$0xff] }
  0x69   :  { %486 = vmatpush.msra.mxu0 %v271_v6  ;;  %506 = vmatpush.msra.mxu1 %v272_v7 }
  0x6a   :  { %526 = vmatpush.msra.mxu2 %v273_v8  ;;  %546 = vmatpush.msra.mxu3 %v274_v9 }
  0x6b   :  { %487 = vmatpush.msra.mxu0 %v267_v10  ;;  %507 = vmatpush.msra.mxu1 %v268_v11 }
  0x6c   :  { %527 = vmatpush.msra.mxu2 %v269_v12  ;;  %547 = vmatpush.msra.mxu3 %v270_v13 }
  0x6d   :  { %488 = vmatpush.msra.mxu0 %v263_v14  ;;  %508 = vmatpush.msra.mxu1 %v264_v15 }
  0x6e   :  { %528 = vmatpush.msra.mxu2 %v265_v16  ;;  %548 = vmatpush.msra.mxu3 %v266_v17  ;;  %v564_v16 = vperm.slane %v311_v41, 2 }
  0x6f   :  { %489 = vmatpush.msra.mxu0 %v259_v18  ;;  %509 = vmatpush.msra.mxu1 %v260_v19 }
  0x70   :  { %529 = vmatpush.msra.mxu2 %v261_v20  ;;  %549 = vmatpush.msra.mxu3 %v262_v21 }
  0x71   :  { %490 = vmatpush.msra.mxu0 %v255_v22  ;;  %510 = vmatpush.msra.mxu1 %v256_v23 }
  0x72   :  { %530 = vmatpush.msra.mxu2 %v257_v24  ;;  %550 = vmatpush.msra.mxu3 %v258_v25 }
  0x73   :  { %491 = vmatpush.msra.mxu0 %v251_v26  ;;  %511 = vmatpush.msra.mxu1 %v252_v27 }
  0x74   :  { %531 = vmatpush.msra.mxu2 %v253_v28  ;;  %551 = vmatpush.msra.mxu3 %v254_v29 }
  0x75   :  { %492 = vmatpush.msra.mxu0 %v247_v30  ;;  %512 = vmatpush.msra.mxu1 %v248_v31 }
  0x76   :  { %532 = vmatpush.msra.mxu2 %v249_v32  ;;  %552 = vmatpush.msra.mxu3 %v250_v33 }
  0x77   :  { %493 = vmatmul.f32.vlgmr.msra.gmra.mxu0 %v149_v34  ;;  %513 = vmatmul.f32.vlgmr.msra.gmra.mxu1 %v149_v34 }
  0x78   :  { %533 = vmatmul.f32.vlgmr.msra.gmra.mxu2 %v149_v34  ;;  %553 = vmatmul.f32.vlgmr.msra.gmra.mxu3 %v149_v34 }
  0xc8   :  { %v330_v35 = vpop.f32.mrf.mxu0  ;;  %v350_v36 = vpop.f32.mrf.mxu1 }
  0xd2   :  { %v414_v38 = vpop.f32.mrf.mxu0  ;;  %v434_v39 = vpop.f32.mrf.mxu1 }
  0xd3   :  { %v390_v37 = vpop.f32.mrf.mxu3  ;;  %v415_v45 = vadd.f32 %v414_v38, %v330_v35  ;;  %v435_v46 = vadd.f32 %v434_v39, %v350_v36 }
  0xd7   :  { %v370_v48 = vpop.f32.mrf.mxu2 }
  0xdf   :  { %v474_v47 = vpop.f32.mrf.mxu3 }
  0xe0   :  { %v475_v62 = vadd.f32 %v474_v47, %v390_v37 }
  0xeb   :  { %v454_v5 = vpop.f32.mrf.mxu2 }
  0xec   :  { %v455_v14 = vadd.f32 %v454_v5, %v370_v48 }
  0xf4   :  { %v494_v51 = vpop.f32.mrf.mxu0  ;;  %v514_v52 = vpop.f32.mrf.mxu1 }
  0xf5   :  { %v557_v53 = vadd.f32 %v494_v51, %v415_v45  ;;  %v558_v55 = vadd.f32 %v514_v52, %v435_v46 }
  0xf7   :  { %v570_v57 = vadd.f32 %v562_v49, %v557_v53  ;;  %v571_v58 = vadd.f32 %v563_v50, %v558_v55 }
  0xf9   :  { %v576_v60 = vadd.f32 %v575_v54, %v570_v57  ;;  %v598_v61 = vadd.f32 %v597_v56, %v571_v58 }
  0xfb   :  { %v661_v0 = vmul.f32 -1.442695, %v576_v60  ;;  %v662_v1 = vmul.f32 -1.442695, %v598_v61  ;;  %v554_v2 = vpop.f32.mrf.mxu3  ;;  %v534_v13 = vpop.f32.mrf.mxu2 }
  0xfc   :  { %v560_v3 = vadd.f32 %v554_v2, %v475_v62  ;;  %v559_v15 = vadd.f32 %v534_v13, %v455_v14 }
  0xfd   :  { %674 = vpow2.f32 %v661_v0 }
  0xfe   :  { %676 = vpow2.f32 %v662_v1  ;;  %v573_v6 = vadd.f32 %v565_v63, %v560_v3  ;;  %v572_v20 = vadd.f32 %v564_v16, %v559_v15 }
 0x100   :  { %v624_v7 = vadd.f32 %v623_v4, %v573_v6 }
 0x102   :  { %v663_v8 = vmul.f32 -1.442695, %v624_v7 }
 0x103   :  { %v675_v9 = vpop.eup %674 }
 0x104   :  { %v677_v10 = vpop.eup %676  ;;  %v580_v11 = vadd.f32 1.0, %v675_v9  ;;  %678 = vpow2.f32 %v663_v8 }
 0x105   :  { %v602_v12 = vadd.f32 1.0, %v677_v10 }
 0x106   :  { %680 = vrcp.f32 %v580_v11  ;;  %v592_v26 = vand.u32 2147483648, %v580_v11  ;;  %v590_v29 = vand.u32 2147483647, %v580_v11  ;;  %vm586_vm3 = vweird.f32 %v580_v11 }
 0x107   :  { %682 = vrcp.f32 %v602_v12  ;;  %v614_v27 = vand.u32 2147483648, %v602_v12  ;;  %v612_v31 = vand.u32 2147483647, %v602_v12  ;;  %vm608_vm4 = vweird.f32 %v602_v12 }
 0x108   :  { %v593_v34 = vor.u32 1.1754944e-38, %v592_v26  ;;  %vm591_vm6 = vcmp.eq.f32.partialorder %v590_v29, 8.507059e+37 }
 0x109   :  { %v615_v38 = vor.u32 1.1754944e-38, %v614_v27  ;;  %vm613_vm8 = vcmp.eq.f32.partialorder %v612_v31, 8.507059e+37 }
 0x10a   :  { %v679_v17 = vpop.eup %678 }
 0x10b   :  { %v628_v18 = vadd.f32 1.0, %v679_v17 }
 0x10c   :  { %v681_v19 = vpop.eup %680 }
 0x10d   :  { %v683_v21 = vpop.eup %682  ;;  %v582_v22 = vmul.f32 %v681_v19, %v580_v11  ;;  %684 = vrcp.f32 %v628_v18  ;;  %vm587_vm1 = vweird.f32 %v681_v19  ;;  %v640_v50 = vand.u32 2147483648, %v628_v18 }
 0x10e   :  { %v604_v23 = vmul.f32 %v683_v21, %v602_v12  ;;  %686 = vtanh.f32 %v572_v20  ;;  %vm609_vm2 = vweird.f32 %v683_v21  ;;  %vm588_vm5 = vmor %vm586_vm3, %vm587_vm1  ;;  %vm634_vm10 = vweird.f32 %v628_v18 }
 0x10f   :  { %v583_v24 = vsub.f32 1.0, %v582_v22  ;;  %vm610_vm7 = vmor %vm608_vm4, %vm609_vm2  ;;  %v638_v51 = vand.u32 2147483647, %v628_v18  ;;  %v641_v53 = vor.u32 1.1754944e-38, %v640_v50 }
 0x110   :  { %v605_v25 = vsub.f32 1.0, %v604_v23 }
 0x111   :  { %v584_v28 = vmul.f32 %v681_v19, %v583_v24  ;;  %vm639_vm12 = vcmp.eq.f32.partialorder %v638_v51, 8.507059e+37 }
 0x112   :  { %v606_v30 = vmul.f32 %v683_v21, %v605_v25 }
 0x113   :  { %v685_v32 = vpop.eup %684  ;;  %v585_v33 = vadd.f32 %v681_v19, %v584_v28 }
 0x114   :  { %v607_v35 = vadd.f32 %v683_v21, %v606_v30  ;;  %v630_v36 = vmul.f32 %v685_v32, %v628_v18  ;;  %v687_v39 = vpop.eup %686  ;;  %vm635_vm9 = vweird.f32 %v685_v32 }
 0x115   :  { %v589_v37 = vsel %vm588_vm5, %v681_v19, %v585_v33  ;;  %vm636_vm11 = vmor %vm634_vm10, %vm635_vm9 }
 0x116   :  { %v594_v40 = vsel %vm591_vm6, %v593_v34, %v589_v37  ;;  %v611_v41 = vsel %vm610_vm7, %v683_v21, %v607_v35  ;;  %v631_v42 = vsub.f32 1.0, %v630_v36 }
 0x117   :  { %v616_v43 = vsel %vm613_vm8, %v615_v38, %v611_v41  ;;  %v619_v45 = vmul.f32 %v687_v39, %v594_v40 }
 0x118   :  { %v620_v46 = vmul.f32 %v616_v43, %v998_v44  ;;  %v632_v47 = vmul.f32 %v685_v32, %v631_v42 }
 0x11a   :  { %v621_v48 = vadd.f32 %v620_v46, %v619_v45  ;;  %v633_v49 = vadd.f32 %v685_v32, %v632_v47 }
 0x11c   :  { %688 = vtanh.f32 %v621_v48  ;;  %647 = vst [vmem:[%s1019_s9 + $0x8] sm:$0xff] %v621_v48  ;;  %v637_v52 = vsel %vm636_vm11, %v685_v32, %v633_v49 }
 0x11d   :  { %v642_v55 = vsel %vm639_vm12, %v641_v53, %v637_v52 }
 0x122   :  { %v689_v54 = vpop.eup %688 }
 0x123   :  { %v645_v56 = vmul.f32 %v689_v54, %v642_v55 }
 0x125   :  { %646 = vst [vmem:[%s1019_s9] sm:$0xff] %v645_v56 }
 0x126   :  { %652 = vsyncpa [#allocation3], 1 }
 0x127   :  { %653 = vsyncpa [#allocation5], 1 }
 0x128   :  { %654 = vsyncpa [#allocation8], 1 }
 0x129   :  { %655 = vsyncpa [#allocation11], 1 }
 0x12a   :  { %656 = vsyncpa [#allocation14], 1 }

</bundles_post_ra>
